<compile_context>
chip_gen: v7x
topology: tpu7x:2x2x1
jax: 0.10.0
libtpu: 0.0.40
codegen_flags: <defaults>
</compile_context>

<pallas_src>
import functools

import jax
import jax.numpy as jnp
from jax.experimental import pallas as pl
from jax.experimental.pallas import tpu as pltpu

NEG_INF = -1e30  # matches masked_softmax's (1 - mask) * -1e30 convention


def _round_up(n, m):
    return ((n + m - 1) // m) * m


# ---------------------------------------------------------------------------
# Embedding projection + 2-layer highway (flattened rows -> big MXU matmuls)
# ---------------------------------------------------------------------------
def _emb_proj_highway_kernel(e_ref, wp_ref,
                             wg1_ref, bg1_ref, wt1_ref, bt1_ref,
                             wg2_ref, bg2_ref, wt2_ref, bt2_ref,
                             o_ref):
    x = jnp.dot(e_ref[...], wp_ref[...], preferred_element_type=jnp.float32)   # (RB, D)
    for wg, bg, wt, bt in ((wg1_ref, bg1_ref, wt1_ref, bt1_ref),
                           (wg2_ref, bg2_ref, wt2_ref, bt2_ref)):
        g = jax.nn.sigmoid(jnp.dot(x, wg[...], preferred_element_type=jnp.float32) + bg[...])
        t = jax.nn.relu(jnp.dot(x, wt[...], preferred_element_type=jnp.float32) + bt[...])
        x = g * t + (1.0 - g) * x
    o_ref[...] = x


def emb_proj_highway(emb, p):
    """emb: (..., E) -> (..., D).  Rows are flattened and tiled in RB-row blocks."""
    lead = emb.shape[:-1]
    E = emb.shape[-1]
    D = p["wp"].shape[1]
    N = 1
    for s in lead:
        N *= s
    x = emb.reshape(N, E)

    RB = min(512, _round_up(N, 8))          # 512-row blocks at real shapes, no giant fallback
    Np = _round_up(N, RB)
    if Np != N:
        x = jnp.pad(x, ((0, Np - N), (0, 0)))

    weight_keys = ("wp", "wg1", "bg1", "wt1", "bt1", "wg2", "bg2", "wt2", "bt2")
    out = pl.pallas_call(
        _emb_proj_highway_kernel,
        out_shape=jax.ShapeDtypeStruct((Np, D), jnp.float32),
        grid_spec=pltpu.PrefetchScalarGridSpec(
            num_scalar_prefetch=0,
            grid=(Np // RB,),
            in_specs=[pl.BlockSpec((RB, E), lambda i: (i, 0))]
                     + [pl.BlockSpec(p[k].shape, lambda i: (0, 0)) for k in weight_keys],
            out_specs=pl.BlockSpec((RB, D), lambda i: (i, 0)),
        ),
        compiler_params=pltpu.CompilerParams(
            dimension_semantics=("parallel",),
            vmem_limit_bytes=32 * 1024 * 1024),
    )(x, *[p[k] for k in weight_keys])
    return out[:N].reshape(*lead, D)


# ---------------------------------------------------------------------------
# Fused bidirectional LSTM layer.
#   * hoisted input projection: one big MXU matmul per direction
#   * single recurrence loop over T with fwd+bwd state stacked as (2B, H)
#   * time-major flat gate scratch -> contiguous (B, 4H) per-step reads
#   * output emitted directly as (L, B, 2H): no post-kernel transpose
# ---------------------------------------------------------------------------
def _bilstm_kernel(x_ref, m_ref, wih_ref, whh_ref, b_ref, o_ref,
                   gxf_ref, gxb_ref, h_ref, c_ref, *, hidden, batch, seqlen):
    H, B, T = hidden, batch, seqlen

    # (1) Hoisted input projection: (L*B, Din) @ (Din, 4H) once per direction.
    x = x_ref[...]                                                        # (L*B, Din)
    gxf_ref[...] = jnp.dot(x, wih_ref[0], preferred_element_type=jnp.float32) + b_ref[0]
    gxb_ref[...] = jnp.dot(x, wih_ref[1], preferred_element_type=jnp.float32) + b_ref[1]

    # (2) Fused fwd/bwd recurrence: only (B, H) x (H, 4H) matmuls + VPU/EUP gates per step.
    h_ref[...] = jnp.zeros_like(h_ref)
    c_ref[...] = jnp.zeros_like(c_ref)
    whh_f = whh_ref[0]
    whh_b = whh_ref[1]
    # TODO(synk): whh could be held resident in the MXU across the recurrence via
    # pltpu.matmul_push_rhs / matmul_acc_lhs / matmul_pop.

    def step(t, carry):
        tb = T - 1 - t
        h = h_ref[...]                                                    # (2B, H)
        c_prev = c_ref[...]
        # contiguous, time-major per-step gate slabs (no per-row gather / concat)
        gx_t = jnp.concatenate(
            [gxf_ref[pl.ds(t * B, B), :], gxb_ref[pl.ds(tb * B, B), :]], axis=0)   # (2B, 4H)
        hh = jnp.concatenate(
            [jnp.dot(h[0:B], whh_f, preferred_element_type=jnp.float32),
             jnp.dot(h[B:2 * B], whh_b, preferred_element_type=jnp.float32)], axis=0)
        gates = gx_t + hh
        # PyTorch LSTM gate order: i, f, g, o
        i = jax.nn.sigmoid(gates[:, 0 * H:1 * H])
        f = jax.nn.sigmoid(gates[:, 1 * H:2 * H])
        g = jnp.tanh(gates[:, 2 * H:3 * H])
        o = jax.nn.sigmoid(gates[:, 3 * H:4 * H])
        c_new = f * c_prev + i * g
        h_new = o * jnp.tanh(c_new)
        # packed-sequence semantics: freeze state / emit zeros at padded positions
        mf = m_ref[t]                                                     # (B, 1)
        mb = m_ref[tb]
        m = jnp.concatenate([mf, mb], axis=0)                             # (2B, 1)
        h_ref[...] = m * h_new + (1.0 - m) * h
        c_ref[...] = m * c_new + (1.0 - m) * c_prev
        o_ref[t, :, 0:H] = mf * h_new[0:B]                                # fwd half
        o_ref[tb, :, H:2 * H] = mb * h_new[B:2 * B]                       # bwd half
        return carry

    jax.lax.fori_loop(0, T, step, 0)


def bilstm_layer(x_lbd, mask_lb1, p):
    """x: (L, B, Din) time-major, mask: (L, B, 1).  Returns (L, B, 2H) = [fwd | bwd]."""
    L, B, Din = x_lbd.shape
    H = p["whh"].shape[1]
    x_flat = x_lbd.reshape(L * B, Din)                       # free row-major reshape
    return pl.pallas_call(
        functools.partial(_bilstm_kernel, hidden=H, batch=B, seqlen=L),
        out_shape=jax.ShapeDtypeStruct((L, B, 2 * H), jnp.float32),
        grid_spec=pltpu.PrefetchScalarGridSpec(
            num_scalar_prefetch=0,
            grid=(1,),
            in_specs=[
                pl.BlockSpec((L * B, Din), lambda i: (0, 0)),         # flattened input
                pl.BlockSpec((L, B, 1), lambda i: (0, 0, 0)),         # validity mask
                pl.BlockSpec((2, Din, 4 * H), lambda i: (0, 0, 0)),   # Wih (both directions)
                pl.BlockSpec((2, H, 4 * H), lambda i: (0, 0, 0)),     # Whh
                pl.BlockSpec((2, 1, 4 * H), lambda i: (0, 0, 0)),     # bias
            ],
            out_specs=pl.BlockSpec((L, B, 2 * H), lambda i: (0, 0, 0)),
            scratch_shapes=[
                pltpu.VMEM((L * B, 4 * H), jnp.float32),   # hoisted fwd gates (time-major)
                pltpu.VMEM((L * B, 4 * H), jnp.float32),   # hoisted bwd gates
                pltpu.VMEM((2 * B, H), jnp.float32),       # h state (fwd rows | bwd rows)
                pltpu.VMEM((2 * B, H), jnp.float32),       # c state
            ],
        ),
        compiler_params=pltpu.CompilerParams(
            dimension_semantics=("arbitrary",),
            vmem_limit_bytes=32 * 1024 * 1024),
    )(x_flat, mask_lb1, p["wih"], p["whh"], p["b"])


def rnn_encoder(x_lbd, mask_lb1, layer_params):
    """Emulates RNNEncoder (bidirectional LSTM over packed sequences), time-major I/O."""
    x = x_lbd
    for p in layer_params:
        x = bilstm_layer(x, mask_lb1, p)                     # (L, B, 2H)
    return x


# ---------------------------------------------------------------------------
# BiDAF attention kernel: batch-tiled grid, re-associated co-attention
# ---------------------------------------------------------------------------
def _softmax(x, axis):
    m = jnp.max(x, axis=axis, keepdims=True)
    e = jnp.exp(x - m)
    return e / jnp.sum(e, axis=axis, keepdims=True)


def _bidaf_attention_kernel(c_ref, q_ref, cmask_ref, qmask_ref,
                            cw_ref, qw_ref, cqw_ref, bias_ref, o_ref):
    c = c_ref[...]        # (1, Lc, 2H)
    q = q_ref[...]        # (1, Lq, 2H)
    cm = cmask_ref[...]   # (1, Lc, 1)
    qm = qmask_ref[...]   # (1, 1, Lq)
    bias = bias_ref[0, 0]  # SMEM scalar

    # similarity matrix: width-1 terms as VPU lane reductions, main term on the MXU
    s0 = jnp.sum(c * cw_ref[...], axis=-1, keepdims=True)               # (1, Lc, 1)
    s1 = jnp.sum(q * qw_ref[...], axis=-1, keepdims=True)               # (1, Lq, 1)
    s1t = jnp.transpose(s1, (0, 2, 1))                                   # (1, 1, Lq)
    s2 = jnp.einsum('bcd,bqd->bcq', c * cqw_ref[...], q,
                    preferred_element_type=jnp.float32)                  # (1, Lc, Lq)
    s = s0 + s1t + s2 + bias

    # masked softmaxes
    s1p = _softmax(qm * s + (1.0 - qm) * NEG_INF, axis=-1)               # over question dim
    s2p = _softmax(cm * s + (1.0 - cm) * NEG_INF, axis=1)                # over context dim

    a = jnp.einsum('bcq,bqd->bcd', s1p, q, preferred_element_type=jnp.float32)     # (1, Lc, 2H)

    # re-associated co-attention: s1p @ (s2p^T @ c) -- no (Lc, Lc) intermediate
    s2pt = jnp.transpose(s2p, (0, 2, 1))                                 # (1, Lq, Lc)
    tmp = jnp.einsum('bqk,bkd->bqd', s2pt, c, preferred_element_type=jnp.float32)   # (1, Lq, 2H)
    bmat = jnp.einsum('bcq,bqd->bcd', s1p, tmp, preferred_element_type=jnp.float32)  # (1, Lc, 2H)

    o_ref[...] = jnp.concatenate([c, a, c * a, c * bmat], axis=-1)       # (1, Lc, 8H)


def bidaf_attention(c, q, c_maskf, q_maskf, p):
    B, Lc, D2 = c.shape
    Lq = q.shape[1]
    cmask = c_maskf[:, :, None]   # (B, Lc, 1)
    qmask = q_maskf[:, None, :]   # (B, 1, Lq)
    return pl.pallas_call(
        _bidaf_attention_kernel,
        out_shape=jax.ShapeDtypeStruct((B, Lc, 4 * D2), jnp.float32),
        grid_spec=pltpu.PrefetchScalarGridSpec(
            num_scalar_prefetch=0,
            grid=(B,),                                            # per-batch tiles, pipelined
            in_specs=[pl.BlockSpec((1, Lc, D2), lambda b: (b, 0, 0)),
                      pl.BlockSpec((1, Lq, D2), lambda b: (b, 0, 0)),
                      pl.BlockSpec((1, Lc, 1), lambda b: (b, 0, 0)),
                      pl.BlockSpec((1, 1, Lq), lambda b: (b, 0, 0)),
                      pl.BlockSpec((1, D2), lambda b: (0, 0)),
                      pl.BlockSpec((1, D2), lambda b: (0, 0)),
                      pl.BlockSpec((1, D2), lambda b: (0, 0)),
                      pl.BlockSpec(memory_space=pltpu.MemorySpace.SMEM)],
            out_specs=pl.BlockSpec((1, Lc, 4 * D2), lambda b: (b, 0, 0)),
        ),
        compiler_params=pltpu.CompilerParams(
            dimension_semantics=("parallel",),
            vmem_limit_bytes=32 * 1024 * 1024),
    )(c, q, cmask, qmask, p["c_weight"], p["q_weight"], p["cq_weight"], p["bias"])


# ---------------------------------------------------------------------------
# Output layer: batch-tiled, VPU-reduction logits, lane-dense (B, 2, Lc) log-softmax
# ---------------------------------------------------------------------------
def _bidaf_output_kernel(att_ref, mod_ref, mod2_ref, cmask_ref,
                         wa1_ref, wm1_ref, wa2_ref, wm2_ref, bias_ref, o_ref):
    Lc = att_ref.shape[1]
    att = att_ref[...]     # (1, Lc, 8H)
    mod = mod_ref[...]     # (1, Lc, 2H)
    mod2 = mod2_ref[...]   # (1, Lc, 2H)
    cm = cmask_ref[...]    # (1, 1, Lc)

    # width-1 "matmuls" as broadcast-multiply + lane reductions (MXU stays free)
    l1 = (jnp.sum(att * wa1_ref[...], axis=-1)
          + jnp.sum(mod * wm1_ref[...], axis=-1) + bias_ref[0, 0]).reshape(1, 1, Lc)
    l2 = (jnp.sum(att * wa2_ref[...], axis=-1)
          + jnp.sum(mod2 * wm2_ref[...], axis=-1) + bias_ref[0, 1]).reshape(1, 1, Lc)

    # lane-dense (1, 2, Lc): masked log-softmax over the context (lane) axis
    x = jnp.concatenate([l1, l2], axis=1)                 # (1, 2, Lc)
    x = cm * x + (1.0 - cm) * NEG_INF
    x = x - jnp.max(x, axis=-1, keepdims=True)
    o_ref[...] = x - jnp.log(jnp.sum(jnp.exp(x), axis=-1, keepdims=True))


def bidaf_output(att, mod, mod2, c_maskf, p):
    B, Lc, D8 = att.shape
    D2 = mod.shape[2]
    cmask = c_maskf[:, None, :]                                               # (B, 1, Lc)
    bias12 = jnp.concatenate([p["ba1"] + p["bm1"], p["ba2"] + p["bm2"]], axis=1)  # (1, 2)
    out = pl.pallas_call(
        _bidaf_output_kernel,
        out_shape=jax.ShapeDtypeStruct((B, 2, Lc), jnp.float32),
        grid_spec=pltpu.PrefetchScalarGridSpec(
            num_scalar_prefetch=0,
            grid=(B,),
            in_specs=[pl.BlockSpec((1, Lc, D8), lambda b: (b, 0, 0)),
                      pl.BlockSpec((1, Lc, D2), lambda b: (b, 0, 0)),
                      pl.BlockSpec((1, Lc, D2), lambda b: (b, 0, 0)),
                      pl.BlockSpec((1, 1, Lc), lambda b: (b, 0, 0)),
                      pl.BlockSpec((1, D8), lambda b: (0, 0)),
                      pl.BlockSpec((1, D2), lambda b: (0, 0)),
                      pl.BlockSpec((1, D8), lambda b: (0, 0)),
                      pl.BlockSpec((1, D2), lambda b: (0, 0)),
                      pl.BlockSpec(memory_space=pltpu.MemorySpace.SMEM)],
            out_specs=pl.BlockSpec((1, 2, Lc), lambda b: (b, 0, 0)),
        ),
        compiler_params=pltpu.CompilerParams(
            dimension_semantics=("parallel",),
            vmem_limit_bytes=32 * 1024 * 1024),
    )(att, mod, mod2, cmask, p["wa1"], p["wm1"], p["wa2"], p["wm2"], bias12)
    return out[:, 0, :], out[:, 1, :]   # (B, Lc) each, as in logits.squeeze()


# ---------------------------------------------------------------------------
# Full BiDAF forward
# ---------------------------------------------------------------------------
def bidaf_forward(params, cw_idxs, qw_idxs):
    c_maskf = (cw_idxs != 0).astype(jnp.float32)              # (B, Lc)
    q_maskf = (qw_idxs != 0).astype(jnp.float32)              # (B, Lq)
    cmask_lb1 = jnp.transpose(c_maskf)[:, :, None]            # (Lc, B, 1)
    qmask_lb1 = jnp.transpose(q_maskf)[:, :, None]            # (Lq, B, 1)

    # Embedding layer (lookup is glue; proj + highway is a Pallas kernel), time-major
    c_emb = jnp.take(params["word_vectors"], jnp.transpose(cw_idxs), axis=0)   # (Lc, B, E)
    q_emb = jnp.take(params["word_vectors"], jnp.transpose(qw_idxs), axis=0)   # (Lq, B, E)
    c_h = emb_proj_highway(c_emb, params["emb"])               # (Lc, B, D)
    q_h = emb_proj_highway(q_emb, params["emb"])

    # Encoder layer
    c_enc = rnn_encoder(c_h, cmask_lb1, params["enc"])         # (Lc, B, 2H)
    q_enc = rnn_encoder(q_h, qmask_lb1, params["enc"])         # (Lq, B, 2H)

    # Attention layer (batch-major)
    c_enc_b = jnp.transpose(c_enc, (1, 0, 2))                  # (B, Lc, 2H)
    q_enc_b = jnp.transpose(q_enc, (1, 0, 2))
    att = bidaf_attention(c_enc_b, q_enc_b, c_maskf, q_maskf, params["att"])   # (B, Lc, 8H)

    # Model encoder layer (2-layer BiLSTM), time-major
    att_t = jnp.transpose(att, (1, 0, 2))                      # (Lc, B, 8H)
    mod = rnn_encoder(att_t, cmask_lb1, params["mod"])         # (Lc, B, 2H)

    # Output layer (includes its own 1-layer BiLSTM over mod)
    mod2 = rnn_encoder(mod, cmask_lb1, params["out_rnn"])      # (Lc, B, 2H)
    mod_b = jnp.transpose(mod, (1, 0, 2))
    mod2_b = jnp.transpose(mod2, (1, 0, 2))
    log_p1, log_p2 = bidaf_output(att, mod_b, mod2_b, c_maskf, params["out"])
    return log_p1, log_p2


# ---------------------------------------------------------------------------
# Deterministic parameter initialization (synthetic; shapes follow __init__)
# ---------------------------------------------------------------------------
def _rand(key, shape, scale=0.1):
    return scale * jax.random.normal(key, shape, dtype=jnp.float32)


def init_lstm_params(key, d_in, d_h):
    ks = jax.random.split(key, 6)
    # direction-stacked weights: [0] = forward, [1] = backward
    return dict(
        wih=jnp.stack([_rand(ks[0], (d_in, 4 * d_h)), _rand(ks[3], (d_in, 4 * d_h))]),
        whh=jnp.stack([_rand(ks[1], (d_h, 4 * d_h)), _rand(ks[4], (d_h, 4 * d_h))]),
        b=jnp.stack([_rand(ks[2], (1, 4 * d_h)), _rand(ks[5], (1, 4 * d_h))]),
    )


def init_params(key, vocab, emb_dim, d_hidden):
    ks = jax.random.split(key, 24)
    wv = _rand(ks[0], (vocab, emb_dim), 1.0)
    wv = wv.at[0].set(0.0)  # padding row
    emb = dict(
        wp=_rand(ks[1], (emb_dim, d_hidden)),
        wg1=_rand(ks[2], (d_hidden, d_hidden)), bg1=_rand(ks[3], (1, d_hidden)),
        wt1=_rand(ks[4], (d_hidden, d_hidden)), bt1=_rand(ks[5], (1, d_hidden)),
        wg2=_rand(ks[6], (d_hidden, d_hidden)), bg2=_rand(ks[7], (1, d_hidden)),
        wt2=_rand(ks[8], (d_hidden, d_hidden)), bt2=_rand(ks[9], (1, d_hidden)),
    )
    enc = [init_lstm_params(ks[10], d_hidden, d_hidden)]
    att = dict(
        c_weight=_rand(ks[11], (1, 2 * d_hidden)),   # stored as a row for VPU reduction
        q_weight=_rand(ks[12], (1, 2 * d_hidden)),
        cq_weight=_rand(ks[13], (1, 2 * d_hidden)),
        bias=jnp.zeros((1, 1), jnp.float32),
    )
    mod = [init_lstm_params(ks[14], 8 * d_hidden, d_hidden),
           init_lstm_params(ks[15], 2 * d_hidden, d_hidden)]
    out_rnn = [init_lstm_params(ks[16], 2 * d_hidden, d_hidden)]
    out = dict(
        wa1=_rand(ks[17], (1, 8 * d_hidden)), ba1=jnp.zeros((1, 1), jnp.float32),
        wm1=_rand(ks[18], (1, 2 * d_hidden)), bm1=jnp.zeros((1, 1), jnp.float32),
        wa2=_rand(ks[19], (1, 8 * d_hidden)), ba2=jnp.zeros((1, 1), jnp.float32),
        wm2=_rand(ks[20], (1, 2 * d_hidden)), bm2=jnp.zeros((1, 1), jnp.float32),
    )
    return dict(word_vectors=wv, emb=emb, enc=enc, att=att,
                mod=mod, out_rnn=out_rnn, out=out)


if __name__ == "__main__":
    key = jax.random.PRNGKey(0)
    VOCAB, EMB_DIM, D_HIDDEN = 40, 48, 32
    B, LC, LQ = 2, 16, 8

    params = init_params(key, VOCAB, EMB_DIM, D_HIDDEN)

    # deterministic word indices; 0 = padding (so masks / lengths are exercised)
    cw_idxs = jnp.array(
        [[1, 2, 3, 4, 5, 6, 7, 8, 9, 10, 11, 12, 13, 14, 15, 16],
         [5, 4, 3, 2, 1, 6, 7, 8, 9, 10, 11, 12, 0, 0, 0, 0]], dtype=jnp.int32)
    qw_idxs = jnp.array(
        [[1, 3, 5, 7, 9, 11, 13, 15],
         [2, 4, 6, 8, 10, 12, 0, 0]], dtype=jnp.int32)

    log_p1, log_p2 = bidaf_forward(params, cw_idxs, qw_idxs)
    jax.block_until_ready((log_p1, log_p2))

    assert log_p1.shape == (B, LC) and log_p2.shape == (B, LC)
    assert bool(jnp.all(jnp.isfinite(log_p1))) and bool(jnp.all(jnp.isfinite(log_p2)))
    print("KERNEL_OK")
</pallas_src>

<mosaic_0001>
module attributes {stable_mosaic.version = 11 : i64} {
  func.func @_emb_proj_highway_kernel(%arg0: i32, %arg1: memref<32x48xf32, #tpu.memory_space<vmem>>, %arg2: memref<48x32xf32, #tpu.memory_space<vmem>>, %arg3: memref<32x32xf32, #tpu.memory_space<vmem>>, %arg4: memref<1x32xf32, #tpu.memory_space<vmem>>, %arg5: memref<32x32xf32, #tpu.memory_space<vmem>>, %arg6: memref<1x32xf32, #tpu.memory_space<vmem>>, %arg7: memref<32x32xf32, #tpu.memory_space<vmem>>, %arg8: memref<1x32xf32, #tpu.memory_space<vmem>>, %arg9: memref<32x32xf32, #tpu.memory_space<vmem>>, %arg10: memref<1x32xf32, #tpu.memory_space<vmem>>, %arg11: memref<32x32xf32, #tpu.memory_space<vmem>>) attributes {dimension_semantics = [#tpu.dimension_semantics<parallel>], iteration_bounds = array<i64: 1>, scalar_prefetch = 0 : i64, scratch_operands = 0 : i64, tpu.core_type = #tpu.core_type<tc>, window_params = [{transform_indices = @transform_0, window_bounds = array<i64: 32, 48>}, {pipeline_mode = #tpu.pipeline_mode<synchronous>, transform_indices = @transform_1, window_bounds = array<i64: 48, 32>}, {pipeline_mode = #tpu.pipeline_mode<synchronous>, transform_indices = @transform_2, window_bounds = array<i64: 32, 32>}, {pipeline_mode = #tpu.pipeline_mode<synchronous>, transform_indices = @transform_3, window_bounds = array<i64: 1, 32>}, {pipeline_mode = #tpu.pipeline_mode<synchronous>, transform_indices = @transform_4, window_bounds = array<i64: 32, 32>}, {pipeline_mode = #tpu.pipeline_mode<synchronous>, transform_indices = @transform_5, window_bounds = array<i64: 1, 32>}, {pipeline_mode = #tpu.pipeline_mode<synchronous>, transform_indices = @transform_6, window_bounds = array<i64: 32, 32>}, {pipeline_mode = #tpu.pipeline_mode<synchronous>, transform_indices = @transform_7, window_bounds = array<i64: 1, 32>}, {pipeline_mode = #tpu.pipeline_mode<synchronous>, transform_indices = @transform_8, window_bounds = array<i64: 32, 32>}, {pipeline_mode = #tpu.pipeline_mode<synchronous>, transform_indices = @transform_9, window_bounds = array<i64: 1, 32>}, {transform_indices = @transform_10, window_bounds = array<i64: 32, 32>}]} {
    %c0 = arith.constant 0 : index
    %c0_0 = arith.constant 0 : index
    %0 = vector.load %arg1[%c0, %c0_0] : memref<32x48xf32, #tpu.memory_space<vmem>>, vector<32x48xf32>
    %c0_1 = arith.constant 0 : index
    %c0_2 = arith.constant 0 : index
    %1 = vector.load %arg2[%c0_1, %c0_2] : memref<48x32xf32, #tpu.memory_space<vmem>>, vector<48x32xf32>
    %cst = arith.constant dense<0.000000e+00> : vector<32x32xf32>
    %2 = tpu.matmul %0, %1, %cst {dimension_numbers = #tpu.dot_dimension_numbers<[1], [0], [0], [1], [0, 0, 1, 1], [], []>} : vector<32x48xf32>, vector<48x32xf32>, vector<32x32xf32> -> vector<32x32xf32>
    %c0_3 = arith.constant 0 : index
    %c0_4 = arith.constant 0 : index
    %3 = vector.load %arg3[%c0_3, %c0_4] : memref<32x32xf32, #tpu.memory_space<vmem>>, vector<32x32xf32>
    %cst_5 = arith.constant dense<0.000000e+00> : vector<32x32xf32>
    %4 = tpu.matmul %2, %3, %cst_5 {dimension_numbers = #tpu.dot_dimension_numbers<[1], [0], [0], [1], [0, 0, 1, 1], [], []>} : vector<32x32xf32>, vector<32x32xf32>, vector<32x32xf32> -> vector<32x32xf32>
    %c0_6 = arith.constant 0 : index
    %c0_7 = arith.constant 0 : index
    %5 = vector.load %arg4[%c0_6, %c0_7] : memref<1x32xf32, #tpu.memory_space<vmem>>, vector<1x32xf32>
    %6 = vector.broadcast %5 : vector<1x32xf32> to vector<32x32xf32>
    %7 = arith.addf %4, %6 : vector<32x32xf32>
    %8 = arith.negf %7 : vector<32x32xf32>
    %9 = math.exp %8 : vector<32x32xf32>
    %cst_8 = arith.constant 1.000000e+00 : f32
    %10 = vector.broadcast %cst_8 : f32 to vector<32x32xf32>
    %11 = arith.addf %10, %9 : vector<32x32xf32>
    %12 = arith.divf %10, %11 : vector<32x32xf32>
    %c0_9 = arith.constant 0 : index
    %c0_10 = arith.constant 0 : index
    %13 = vector.load %arg5[%c0_9, %c0_10] : memref<32x32xf32, #tpu.memory_space<vmem>>, vector<32x32xf32>
    %cst_11 = arith.constant dense<0.000000e+00> : vector<32x32xf32>
    %14 = tpu.matmul %2, %13, %cst_11 {dimension_numbers = #tpu.dot_dimension_numbers<[1], [0], [0], [1], [0, 0, 1, 1], [], []>} : vector<32x32xf32>, vector<32x32xf32>, vector<32x32xf32> -> vector<32x32xf32>
    %c0_12 = arith.constant 0 : index
    %c0_13 = arith.constant 0 : index
    %15 = vector.load %arg6[%c0_12, %c0_13] : memref<1x32xf32, #tpu.memory_space<vmem>>, vector<1x32xf32>
    %16 = vector.broadcast %15 : vector<1x32xf32> to vector<32x32xf32>
    %17 = arith.addf %14, %16 : vector<32x32xf32>
    %cst_14 = arith.constant 0.000000e+00 : f32
    %18 = vector.broadcast %cst_14 : f32 to vector<32x32xf32>
    %19 = arith.maximumf %17, %18 : vector<32x32xf32>
    %20 = arith.mulf %12, %19 : vector<32x32xf32>
    %cst_15 = arith.constant 1.000000e+00 : f32
    %21 = vector.broadcast %cst_15 : f32 to vector<32x32xf32>
    %22 = arith.subf %21, %12 : vector<32x32xf32>
    %23 = arith.mulf %22, %2 : vector<32x32xf32>
    %24 = arith.addf %20, %23 : vector<32x32xf32>
    %c0_16 = arith.constant 0 : index
    %c0_17 = arith.constant 0 : index
    %25 = vector.load %arg7[%c0_16, %c0_17] : memref<32x32xf32, #tpu.memory_space<vmem>>, vector<32x32xf32>
    %cst_18 = arith.constant dense<0.000000e+00> : vector<32x32xf32>
    %26 = tpu.matmul %24, %25, %cst_18 {dimension_numbers = #tpu.dot_dimension_numbers<[1], [0], [0], [1], [0, 0, 1, 1], [], []>} : vector<32x32xf32>, vector<32x32xf32>, vector<32x32xf32> -> vector<32x32xf32>
    %c0_19 = arith.constant 0 : index
    %c0_20 = arith.constant 0 : index
    %27 = vector.load %arg8[%c0_19, %c0_20] : memref<1x32xf32, #tpu.memory_space<vmem>>, vector<1x32xf32>
    %28 = vector.broadcast %27 : vector<1x32xf32> to vector<32x32xf32>
    %29 = arith.addf %26, %28 : vector<32x32xf32>
    %30 = arith.negf %29 : vector<32x32xf32>
    %31 = math.exp %30 : vector<32x32xf32>
    %cst_21 = arith.constant 1.000000e+00 : f32
    %32 = vector.broadcast %cst_21 : f32 to vector<32x32xf32>
    %33 = arith.addf %32, %31 : vector<32x32xf32>
    %34 = arith.divf %32, %33 : vector<32x32xf32>
    %c0_22 = arith.constant 0 : index
    %c0_23 = arith.constant 0 : index
    %35 = vector.load %arg9[%c0_22, %c0_23] : memref<32x32xf32, #tpu.memory_space<vmem>>, vector<32x32xf32>
    %cst_24 = arith.constant dense<0.000000e+00> : vector<32x32xf32>
    %36 = tpu.matmul %24, %35, %cst_24 {dimension_numbers = #tpu.dot_dimension_numbers<[1], [0], [0], [1], [0, 0, 1, 1], [], []>} : vector<32x32xf32>, vector<32x32xf32>, vector<32x32xf32> -> vector<32x32xf32>
    %c0_25 = arith.constant 0 : index
    %c0_26 = arith.constant 0 : index
    %37 = vector.load %arg10[%c0_25, %c0_26] : memref<1x32xf32, #tpu.memory_space<vmem>>, vector<1x32xf32>
    %38 = vector.broadcast %37 : vector<1x32xf32> to vector<32x32xf32>
    %39 = arith.addf %36, %38 : vector<32x32xf32>
    %cst_27 = arith.constant 0.000000e+00 : f32
    %40 = vector.broadcast %cst_27 : f32 to vector<32x32xf32>
    %41 = arith.maximumf %39, %40 : vector<32x32xf32>
    %42 = arith.mulf %34, %41 : vector<32x32xf32>
    %cst_28 = arith.constant 1.000000e+00 : f32
    %43 = vector.broadcast %cst_28 : f32 to vector<32x32xf32>
    %44 = arith.subf %43, %34 : vector<32x32xf32>
    %45 = arith.mulf %44, %24 : vector<32x32xf32>
    %46 = arith.addf %42, %45 : vector<32x32xf32>
    %c0_29 = arith.constant 0 : index
    %c0_30 = arith.constant 0 : index
    %47 = vector.load %arg11[%c0_29, %c0_30] : memref<32x32xf32, #tpu.memory_space<vmem>>, vector<32x32xf32>
    tpu.vector_store %arg11[%c0_29, %c0_30], %46 {strides = array<i32>} : memref<32x32xf32, #tpu.memory_space<vmem>>, vector<32x32xf32>,
    return
  }
  func.func @transform_0(%arg0: i32) -> (i32, i32) {
    %c0_i32 = arith.constant 0 : i32
    %c0_i32_0 = arith.constant 0 : i32
    return %arg0, %c0_i32 : i32, i32
  }
  func.func @transform_1(%arg0: i32) -> (i32, i32) {
    %c0_i32 = arith.constant 0 : i32
    %c0_i32_0 = arith.constant 0 : i32
    %c0_i32_1 = arith.constant 0 : i32
    return %c0_i32, %c0_i32_0 : i32, i32
  }
  func.func @transform_2(%arg0: i32) -> (i32, i32) {
    %c0_i32 = arith.constant 0 : i32
    %c0_i32_0 = arith.constant 0 : i32
    %c0_i32_1 = arith.constant 0 : i32
    return %c0_i32, %c0_i32_0 : i32, i32
  }
  func.func @transform_3(%arg0: i32) -> (i32, i32) {
    %c0_i32 = arith.constant 0 : i32
    %c0_i32_0 = arith.constant 0 : i32
    %c0_i32_1 = arith.constant 0 : i32
    return %c0_i32, %c0_i32_0 : i32, i32
  }
  func.func @transform_4(%arg0: i32) -> (i32, i32) {
    %c0_i32 = arith.constant 0 : i32
    %c0_i32_0 = arith.constant 0 : i32
    %c0_i32_1 = arith.constant 0 : i32
    return %c0_i32, %c0_i32_0 : i32, i32
  }
  func.func @transform_5(%arg0: i32) -> (i32, i32) {
    %c0_i32 = arith.constant 0 : i32
    %c0_i32_0 = arith.constant 0 : i32
    %c0_i32_1 = arith.constant 0 : i32
    return %c0_i32, %c0_i32_0 : i32, i32
  }
  func.func @transform_6(%arg0: i32) -> (i32, i32) {
    %c0_i32 = arith.constant 0 : i32
    %c0_i32_0 = arith.constant 0 : i32
    %c0_i32_1 = arith.constant 0 : i32
    return %c0_i32, %c0_i32_0 : i32, i32
  }
  func.func @transform_7(%arg0: i32) -> (i32, i32) {
    %c0_i32 = arith.constant 0 : i32
    %c0_i32_0 = arith.constant 0 : i32
    %c0_i32_1 = arith.constant 0 : i32
    return %c0_i32, %c0_i32_0 : i32, i32
  }
  func.func @transform_8(%arg0: i32) -> (i32, i32) {
    %c0_i32 = arith.constant 0 : i32
    %c0_i32_0 = arith.constant 0 : i32
    %c0_i32_1 = arith.constant 0 : i32
    return %c0_i32, %c0_i32_0 : i32, i32
  }
  func.func @transform_9(%arg0: i32) -> (i32, i32) {
    %c0_i32 = arith.constant 0 : i32
    %c0_i32_0 = arith.constant 0 : i32
    %c0_i32_1 = arith.constant 0 : i32
    return %c0_i32, %c0_i32_0 : i32, i32
  }
  func.func @transform_10(%arg0: i32) -> (i32, i32) {
    %c0_i32 = arith.constant 0 : i32
    %c0_i32_0 = arith.constant 0 : i32
    return %arg0, %c0_i32 : i32, i32
  }
}

</mosaic_0001>

<bundles_post_ra>
// kernel: tpu_custom_call.1
= control target key start
LH: loop header
LB: loop body
LE: loop exit
PB: predicated region body
PF: predicated region fallthrough
CT: control target
= control target key end

     0   :  { %15 = vsyncpa [#allocation3], 0  ;;  %s1227_s0 = inlined_call_operand.vmem [shape: f32[32,48], index: 0, kind: input, shape index: {}]   ;;  %s1228_s1 = inlined_call_operand.vmem [shape: f32[48,32], index: 1, kind: input, shape index: {}]   ;;  %s1229_s2 = inlined_call_operand.vmem [shape: f32[32,32], index: 2, kind: input, shape index: {}]   ;;  %s1230_s3 = inlined_call_operand.vmem [shape: f32[1,32], index: 3, kind: input, shape index: {}]   ;;  %s1231_s4 = inlined_call_operand.hbm [shape: f32[32,32], index: 4, kind: input, shape index: {}]   ;;  %s1232_s5 = inlined_call_operand.vmem [shape: f32[1,32], index: 5, kind: input, shape index: {}]   ;;  %s1233_s6 = inlined_call_operand.vmem [shape: f32[32,32], index: 6, kind: input, shape index: {}]   ;;  %s1234_s7 = inlined_call_operand.vmem [shape: f32[1,32], index: 7, kind: input, shape index: {}]   ;;  %s1235_s8 = inlined_call_operand.hbm [shape: f32[32,32], index: 8, kind: input, shape index: {}]   ;;  %s1236_s9 = inlined_call_operand.vmem [shape: f32[1,32], index: 9, kind: input, shape index: {}]   ;;  %s1237_s10 = inlined_call_operand.hbm [shape: f32[32,32], index: 10, kind: output, shape index: {}]  }
   0x1   :  { %16 = vsyncpa [#allocation6], 0 }
   0x2   :  { %17 = vsyncpa [#allocation4], 0  ;;  %s992_s13 = smov [#allocation2]   ;;  %s920_s17 = scalar_lea.hbm %s1231_s4, 512 }
   0x3   :  { %s31_s14 = sshll.u32 %s992_s13, 4  ;;  %p921_p0 = scmp.ne.s32.totalorder %s1231_s4, %s920_s17  ;;  %s32_s14 = int_to_ptr.vmem [resolvable:$true] %s31_s14 }
   0x4   :  { %p924_p1 = scmp.lt.u32.totalorder %s920_s17, %s1231_s4 }
   0x6   :  { %p926_p2 = pnand %p924_p1, %p921_p0 }
   0x8   :  { %929 = shalt.err (!%p926_p2)
}
   0x9   :  { %s930_s22 = scalar_lea.vmem %s32_s14, 512  ;;  %p935_p4 = scmp.lt.s32.totalorder %s32_s14, %s32_s14 }
   0xa   :  { %p931_p3 = scmp.ne.s32.totalorder %s32_s14, %s930_s22  ;;  %p936_p5 = scmp.lt.s32.totalorder %s930_s22, %s930_s22 }
   0xc   :  { %p937_p6 = por %p936_p5, %p935_p4 }
   0xe   :  { %p938_p7 = pnand %p937_p6, %p931_p3 }
  0x10   :  { %941 = shalt.err (!%p938_p7)
}
  0x11   :  { %s993_s23 = smov 128   ;;  %s994_s24 = smov 8  }
  0x12   :  { %37 = dma.hbm_to_vmem [thread:$0]  %s1231_s4, 512, %s32_s14, [#allocation3], %s993_s23, %s993_s23, %s994_s24  }
  0x13   :  { %s995_s27 = smov [#allocation5]   ;;  %s942_s11 = scalar_lea.hbm %s1235_s8, 512 }
  0x14   :  { %s49_s28 = sshll.u32 %s995_s27, 4  ;;  %p943_p8 = scmp.ne.s32.totalorder %s1235_s8, %s942_s11  ;;  %s50_s28 = int_to_ptr.vmem [resolvable:$true] %s49_s28 }
  0x15   :  { %p946_p9 = scmp.lt.u32.totalorder %s942_s11, %s1235_s8 }
  0x17   :  { %p948_p10 = pnand %p946_p9, %p943_p8 }
  0x19   :  { %951 = shalt.err (!%p948_p10)
}
  0x1a   :  { %s952_s17 = scalar_lea.vmem %s50_s28, 512  ;;  %p957_p12 = scmp.lt.s32.totalorder %s50_s28, %s50_s28 }
  0x1b   :  { %p953_p11 = scmp.ne.s32.totalorder %s50_s28, %s952_s17  ;;  %p958_p13 = scmp.lt.s32.totalorder %s952_s17, %s952_s17 }
  0x1d   :  { %p959_p0 = por %p958_p13, %p957_p12 }
  0x1f   :  { %p960_p1 = pnand %p959_p0, %p953_p11 }
  0x21   :  { %963 = shalt.err (!%p960_p1)
}
  0x22   :  { %55 = dma.hbm_to_vmem [thread:$0]  %s1235_s8, 512, %s50_s28, [#allocation6], %s993_s23, %s993_s23, %s994_s24  }
  0x23   :  { %986 = dma.done.wait [#allocation3], 512  }
  0x24   :  { %987 = vsyncadd [#allocation3], 4294966784 }
  0x25   :  { %988 = dma.done.wait [#allocation6], 512  }
  0x26   :  { %989 = vsyncadd [#allocation6], 4294966784  ;;  %v68_v0 = vld [vmem:[%s1228_s1] sm:$0xff]  ;;  %v69_v1 = vld [vmem:[%s1228_s1 + $0x8] sm:$0xff]  ;;  %vm74_vm0 = vcmask 392192   ;;  %vm183_vm1 = vcmask 261120  }
  0x27   :  { %v70_v2 = vld [vmem:[%s1228_s1 + $0x10] sm:$0xff]  ;;  %v839_v3 = vpack.c.bf16 %v69_v1, %v68_v0  ;;  %v71_v4 = vld [vmem:[%s1228_s1 + $0x18] sm:$0xff]  ;;  %v72_v6 = vld [vmem:[%s1228_s1 + $0x20] sm:$0xff] }
  0x28   :  { %v843_v5 = vpack.c.bf16 %v71_v4, %v70_v2  ;;  %v73_v7 = vld [vmem:[%s1228_s1 + $0x28] sm:$0xff]  ;;  %v64_v8 = vld [vmem:[%s1227_s0] sm:$0xff]  ;;  %v174_v12 = vld [vmem:[%s1229_s2 + $0x10] sm:$0xff] }
  0x29   :  { %840 = vmatprep.subr.bf16.mxu0 %v839_v3  ;;  %777 = vmatprep.mubr.msk.f32.mxu0 %vm74_vm0, %v64_v8  ;;  %v172_v9 = vld [vmem:[%s1229_s2] sm:$0xff]  ;;  %v173_v10 = vld [vmem:[%s1229_s2 + $0x8] sm:$0xff]  ;;  %v175_v13 = vld [vmem:[%s1229_s2 + $0x18] sm:$0xff]  ;;  %v847_v14 = vpack.c.bf16 %v73_v7, %v72_v6 }
  0x2a   :  { %842 = vmatpush3.bf16.msra.mxu0 %v839_v3  ;;  %v851_v11 = vpack.c.bf16 %v173_v10, %v172_v9  ;;  %v855_v15 = vpack.c.bf16 %v175_v13, %v174_v12  ;;  %v65_v16 = vld [vmem:[%s1227_s0 + $0x8] sm:$0xff]  ;;  %v66_v17 = vld [vmem:[%s1227_s0 + $0x10] sm:$0xff]  ;;  %v67_v18 = vld [vmem:[%s1227_s0 + $0x18] sm:$0xff] }
  0x2b   :  { %844 = vmatprep.subr.bf16.mxu0 %v843_v5  ;;  %v305_v19 = vld [vmem:[#allocation2] sm:$0xff]  ;;  %v306_v20 = vld [vmem:[#allocation2 + $0x8] sm:$0xff]  ;;  %v307_v22 = vld [vmem:[#allocation2 + $0x10] sm:$0xff] }
  0x2c   :  { %852 = vmatprep.subr.bf16.mxu1 %v851_v11  ;;  %v859_v21 = vpack.c.bf16 %v306_v20, %v305_v19  ;;  %v308_v23 = vld [vmem:[#allocation2 + $0x18] sm:$0xff]  ;;  %v421_v29 = vld [vmem:[%s1233_s6] sm:$0xff]  ;;  %v422_v30 = vld [vmem:[%s1233_s6 + $0x8] sm:$0xff] }
  0x2d   :  { %854 = vmatpush3.bf16.msra.mxu1 %v851_v11  ;;  %v863_v26 = vpack.c.bf16 %v308_v23, %v307_v22  ;;  %v553_v31 = vld [vmem:[#allocation5] sm:$0xff]  ;;  %v867_v32 = vpack.c.bf16 %v422_v30, %v421_v29  ;;  %v554_v33 = vld [vmem:[#allocation5 + $0x8] sm:$0xff]  ;;  %v423_v35 = vld [vmem:[%s1233_s6 + $0x10] sm:$0xff] }
  0x2e   :  { %846 = vmatpush3.bf16.msra.mxu0 %v843_v5  ;;  %856 = vmatprep.subr.bf16.mxu1 %v855_v15  ;;  %v875_v34 = vpack.c.bf16 %v554_v33, %v553_v31  ;;  %v424_v36 = vld [vmem:[%s1233_s6 + $0x18] sm:$0xff]  ;;  %v555_v37 = vld [vmem:[#allocation5 + $0x10] sm:$0xff]  ;;  %v695_v41 = vld [vmem:[%s1230_s3] ss:$0 sm:$0xff] }
  0x2f   :  { %848 = vmatprep.subr.bf16.mxu0 %v847_v14  ;;  %v871_v38 = vpack.c.bf16 %v424_v36, %v423_v35  ;;  %v556_v39 = vld [vmem:[#allocation5 + $0x18] sm:$0xff]  ;;  %v704_v1 = vld [vmem:[%s1232_s5] ss:$0 sm:$0xff] }
  0x30   :  { %v879_v40 = vpack.c.bf16 %v556_v39, %v555_v37 }
  0x31   :  { %858 = vmatpush3.bf16.msra.mxu1 %v855_v15 }
  0x32   :  { %850 = vmatpush3.bf16.msra.mxu0 %v847_v14  ;;  %860 = vmatprep.subr.bf16.mxu1 %v859_v21 }
  0x33   :  { %868 = vmatprep.subr.bf16.mxu0 %v867_v32 }
  0x35   :  { %778 = vmatmul.mubr.msk.f32.vlgmr.msra.gmra.mrb[0].mxu0 %vm74_vm0, %v65_v16 }
  0x36   :  { %780 = vmatprep.mubr.msk.f32.mxu0 %vm74_vm0, %v66_v17  ;;  %870 = vmatpush3.bf16.msra.mxu0 %v867_v32 }
  0x37   :  { %872 = vmatprep.subr.bf16.mxu0 %v871_v38 }
  0x39   :  { %781 = vmatmul.mubr.msk.f32.gmra.mrb[2].mxu0 %vm74_vm0, %v67_v18 }
  0x3a   :  { %874 = vmatpush3.bf16.msra.mxu0 %v871_v38 }
 0x108   :  { %v1128_v24 = vpop.f32.mrb[0].mxu0 }
 0x109   :  { %v1130_v25 = vpop.f32.mrb[1].mxu0 }
 0x10a   :  { %791 = vmatprep.mubr.msk.f32.mxu1 %vm183_vm1, %v1130_v25 }
 0x10b   :  { %792 = vmatmul.mubr.msk.f32.vlgmr.msra.gmra.mrb[0].mxu1 %vm183_vm1, %v1128_v24 }
 0x10c   :  { %v1136_v27 = vpop.f32.mrb[2].mxu0  ;;  %862 = vmatpush3.bf16.msra.mxu1 %v859_v21 }
 0x10d   :  { %v1138_v28 = vpop.f32.mrb[3].mxu0  ;;  %864 = vmatprep.subr.bf16.mxu1 %v863_v26 }
 0x10e   :  { %794 = vmatprep.mubr.msk.f32.mxu1 %vm183_vm1, %v1138_v28 }
 0x10f   :  { %795 = vmatmul.mubr.msk.f32.gmra.mrb[2].mxu1 %vm183_vm1, %v1136_v27 }
 0x110   :  { %866 = vmatpush3.bf16.msra.mxu1 %v863_v26  ;;  %805 = vmatprep.mubr.msk.f32.mxu1 %vm183_vm1, %v1130_v25 }
 0x111   :  { %876 = vmatprep.subr.bf16.mxu1 %v875_v34 }
 0x113   :  { %806 = vmatmul.mubr.msk.f32.vlgmr.msra.gmra.mrb[4].mxu1 %vm183_vm1, %v1128_v24 }
 0x114   :  { %808 = vmatprep.mubr.msk.f32.mxu1 %vm183_vm1, %v1138_v28  ;;  %878 = vmatpush3.bf16.msra.mxu1 %v875_v34 }
 0x115   :  { %880 = vmatprep.subr.bf16.mxu1 %v879_v40 }
 0x117   :  { %809 = vmatmul.mubr.msk.f32.gmra.mrb[6].mxu1 %vm183_vm1, %v1136_v27 }
 0x118   :  { %882 = vmatpush3.bf16.msra.mxu1 %v879_v40 }
 0x1de   :  { %v793_v42 = vpop.f32.mrb[0].mxu1 }
 0x1df   :  { %v268_v43 = vadd.f32 %v793_v42, %v695_v41  ;;  %v262_v44 = vpop.f32.mrb[1].mxu1 }
 0x1e0   :  { %v263_v45 = vadd.f32 %v695_v41, %v262_v44 }
 0x1e1   :  { %v701_v46 = vmul.f32 -1.442695, %v268_v43 }
 0x1e2   :  { %v700_v47 = vmul.f32 -1.442695, %v263_v45  ;;  %v796_v48 = vpop.f32.mrb[2].mxu1 }
 0x1e3   :  { %888 = vpow2.f32 %v701_v46  ;;  %v278_v49 = vadd.f32 %v796_v48, %v695_v41  ;;  %v272_v50 = vpop.f32.mrb[3].mxu1 }
 0x1e4   :  { %890 = vpow2.f32 %v700_v47  ;;  %v273_v51 = vadd.f32 %v695_v41, %v272_v50 }
 0x1e5   :  { %v703_v52 = vmul.f32 -1.442695, %v278_v49 }
 0x1e6   :  { %v702_v53 = vmul.f32 -1.442695, %v273_v51  ;;  %v807_v54 = vpop.f32.mrb[4].mxu1 }
 0x1e7   :  { %892 = vpow2.f32 %v703_v52  ;;  %v382_v55 = vpop.f32.mrb[5].mxu1  ;;  %v388_v3 = vadd.f32 %v807_v54, %v704_v1  ;;  %v718_v54 = vld [vmem:[%s1236_s9] ss:$0 sm:$0xff]  ;;  %s996_s9 = smov [#allocation7]  }
 0x1e8   :  { %894 = vpow2.f32 %v702_v53  ;;  %v383_v4 = vadd.f32 %v704_v1, %v382_v55  ;;  %s678_s17 = sshll.u32 %s996_s9, 4  ;;  %s679_s17 = int_to_ptr.vmem [resolvable:$true] %s678_s17 }
 0x1e9   :  { %v402_v5 = vmax.f32 %v388_v3, 0.0  ;;  %s964_s4 = scalar_lea.vmem %s679_s17, 512  ;;  %p969_p3 = scmp.lt.s32.totalorder %s679_s17, %s679_s17 }
 0x1ea   :  { %v810_v56 = vpop.f32.mrb[6].mxu1  ;;  %v401_v8 = vmax.f32 %v383_v4, 0.0  ;;  %p965_p2 = scmp.ne.s32.totalorder %s679_s17, %s964_s4  ;;  %p970_p4 = scmp.lt.s32.totalorder %s964_s4, %s964_s4 }
 0x1eb   :  { %v392_v57 = vpop.f32.mrb[7].mxu1  ;;  %v398_v6 = vadd.f32 %v810_v56, %v704_v1 }
 0x1ec   :  { %v393_v9 = vadd.f32 %v704_v1, %v392_v57  ;;  %p971_p5 = por %p970_p4, %p969_p3 }
 0x1ed   :  { %v889_v58 = vpop.eup %888  ;;  %v404_v16 = vmax.f32 %v398_v6, 0.0 }
 0x1ee   :  { %v891_v59 = vpop.eup %890  ;;  %v294_v60 = vadd.f32 1.0, %v889_v58  ;;  %v403_v19 = vmax.f32 %v393_v9, 0.0  ;;  %p972_p6 = pnand %p971_p5, %p965_p2 }
 0x1ef   :  { %v293_v61 = vadd.f32 1.0, %v891_v59 }
 0x1f0   :  { %896 = vrcp.f32 %v294_v60 }
 0x1f1   :  { %v893_v62 = vpop.eup %892  ;;  %898 = vrcp.f32 %v293_v61 }
 0x1f2   :  { %v895_v63 = vpop.eup %894  ;;  %v296_v0 = vadd.f32 1.0, %v893_v62 }
 0x1f3   :  { %v295_v2 = vadd.f32 1.0, %v895_v63 }
 0x1f4   :  { %900 = vrcp.f32 %v296_v0 }
 0x1f5   :  { %902 = vrcp.f32 %v295_v2 }
 0x1fa   :  { %v897_v7 = vpop.eup %896 }
 0x1fb   :  { %v899_v10 = vpop.eup %898  ;;  %v406_v11 = vmul.f32 %v897_v7, %v402_v5  ;;  %v410_v12 = vsub.f32 1.0, %v897_v7 }
 0x1fc   :  { %v405_v13 = vmul.f32 %v899_v10, %v401_v8  ;;  %v409_v14 = vsub.f32 1.0, %v899_v10 }
 0x1fd   :  { %v414_v15 = vmul.f32 %v1128_v24, %v410_v12 }
 0x1fe   :  { %v901_v17 = vpop.eup %900  ;;  %v413_v18 = vmul.f32 %v409_v14, %v1130_v25 }
 0x1ff   :  { %v903_v20 = vpop.eup %902  ;;  %v1172_v21 = vadd.f32 %v414_v15, %v406_v11  ;;  %v408_v22 = vmul.f32 %v901_v17, %v404_v16  ;;  %v412_v23 = vsub.f32 1.0, %v901_v17 }
 0x200   :  { %v1174_v26 = vadd.f32 %v413_v18, %v405_v13  ;;  %v407_v29 = vmul.f32 %v903_v20, %v403_v19  ;;  %v411_v30 = vsub.f32 1.0, %v903_v20 }
 0x201   :  { %v416_v31 = vmul.f32 %v1136_v27, %v412_v23  ;;  %v709_v27 = vld [vmem:[%s1234_s7] ss:$0 sm:$0xff] }
 0x202   :  { %v415_v32 = vmul.f32 %v411_v30, %v1138_v28  ;;  %819 = vmatprep.mubr.msk.f32.mxu0 %vm183_vm1, %v1174_v26  ;;  %833 = vmatprep.mubr.msk.f32.mxu1 %vm183_vm1, %v1174_v26 }
 0x203   :  { %v1182_v24 = vadd.f32 %v416_v31, %v408_v22  ;;  %820 = vmatmul.mubr.msk.f32.vlgmr.msra.gmra.mrb[4].mxu0 %vm183_vm1, %v1172_v21  ;;  %834 = vmatmul.mubr.msk.f32.vlgmr.msra.gmra.mrb[8].mxu1 %vm183_vm1, %v1172_v21 }
 0x204   :  { %v1188_v25 = vadd.f32 %v415_v32, %v407_v29 }
 0x206   :  { %822 = vmatprep.mubr.msk.f32.mxu0 %vm183_vm1, %v1188_v25  ;;  %836 = vmatprep.mubr.msk.f32.mxu1 %vm183_vm1, %v1188_v25 }
 0x207   :  { %823 = vmatmul.mubr.msk.f32.gmra.mrb[6].mxu0 %vm183_vm1, %v1182_v24  ;;  %837 = vmatmul.mubr.msk.f32.gmra.mrb[10].mxu1 %vm183_vm1, %v1182_v24 }
 0x2d6   :  { %v821_v28 = vpop.f32.mrb[4].mxu0  ;;  %v835_v33 = vpop.f32.mrb[8].mxu1 }
 0x2d7   :  { %v516_v34 = vadd.f32 %v821_v28, %v709_v27  ;;  %v510_v35 = vpop.f32.mrb[5].mxu0  ;;  %v630_v36 = vpop.f32.mrb[9].mxu1  ;;  %v636_v57 = vadd.f32 %v835_v33, %v718_v54 }
 0x2d8   :  { %v511_v37 = vadd.f32 %v709_v27, %v510_v35  ;;  %v631_v58 = vadd.f32 %v718_v54, %v630_v36 }
 0x2d9   :  { %v715_v38 = vmul.f32 -1.442695, %v516_v34  ;;  %v650_v59 = vmax.f32 %v636_v57, 0.0 }
 0x2da   :  { %v714_v39 = vmul.f32 -1.442695, %v511_v37  ;;  %v824_v40 = vpop.f32.mrb[6].mxu0  ;;  %v838_v41 = vpop.f32.mrb[10].mxu1  ;;  %v649_v62 = vmax.f32 %v631_v58, 0.0 }
 0x2db   :  { %904 = vpow2.f32 %v715_v38  ;;  %v526_v42 = vadd.f32 %v824_v40, %v709_v27  ;;  %v520_v43 = vpop.f32.mrb[7].mxu0  ;;  %v640_v44 = vpop.f32.mrb[11].mxu1  ;;  %v646_v60 = vadd.f32 %v838_v41, %v718_v54 }
 0x2dc   :  { %906 = vpow2.f32 %v714_v39  ;;  %v521_v45 = vadd.f32 %v709_v27, %v520_v43  ;;  %v641_v63 = vadd.f32 %v718_v54, %v640_v44 }
 0x2dd   :  { %v717_v46 = vmul.f32 -1.442695, %v526_v42  ;;  %v652_v6 = vmax.f32 %v646_v60, 0.0 }
 0x2de   :  { %v716_v47 = vmul.f32 -1.442695, %v521_v45  ;;  %v651_v9 = vmax.f32 %v641_v63, 0.0 }
 0x2df   :  { %908 = vpow2.f32 %v717_v46 }
 0x2e0   :  { %910 = vpow2.f32 %v716_v47 }
 0x2e5   :  { %v905_v48 = vpop.eup %904 }
 0x2e6   :  { %v907_v49 = vpop.eup %906  ;;  %v542_v50 = vadd.f32 1.0, %v905_v48 }
 0x2e7   :  { %v541_v51 = vadd.f32 1.0, %v907_v49 }
 0x2e8   :  { %912 = vrcp.f32 %v542_v50 }
 0x2e9   :  { %v909_v52 = vpop.eup %908  ;;  %914 = vrcp.f32 %v541_v51 }
 0x2ea   :  { %v911_v53 = vpop.eup %910  ;;  %v544_v55 = vadd.f32 1.0, %v909_v52 }
 0x2eb   :  { %v543_v56 = vadd.f32 1.0, %v911_v53 }
 0x2ec   :  { %916 = vrcp.f32 %v544_v55 }
 0x2ed   :  { %918 = vrcp.f32 %v543_v56 }
 0x2f2   :  { %v913_v61 = vpop.eup %912 }
 0x2f3   :  { %v915_v0 = vpop.eup %914  ;;  %v654_v1 = vmul.f32 %v913_v61, %v650_v59  ;;  %v658_v2 = vsub.f32 1.0, %v913_v61 }
 0x2f4   :  { %v653_v3 = vmul.f32 %v915_v0, %v649_v62  ;;  %v657_v4 = vsub.f32 1.0, %v915_v0 }
 0x2f5   :  { %v662_v5 = vmul.f32 %v658_v2, %v1172_v21 }
 0x2f6   :  { %v917_v7 = vpop.eup %916  ;;  %v661_v8 = vmul.f32 %v657_v4, %v1174_v26 }
 0x2f7   :  { %v919_v10 = vpop.eup %918  ;;  %v666_v11 = vadd.f32 %v662_v5, %v654_v1  ;;  %v656_v12 = vmul.f32 %v917_v7, %v652_v6  ;;  %v660_v13 = vsub.f32 1.0, %v917_v7 }
 0x2f8   :  { %v665_v14 = vadd.f32 %v661_v8, %v653_v3  ;;  %v655_v15 = vmul.f32 %v919_v10, %v651_v9  ;;  %v659_v16 = vsub.f32 1.0, %v919_v10 }
 0x2f9   :  { %670 = vst.msk [vmem:[#allocation7 + $0x8] sm:$0xff] %vm183_vm1, %v666_v11  ;;  %v664_v17 = vmul.f32 %v660_v13, %v1182_v24 }
 0x2fa   :  { %669 = vst.msk [vmem:[#allocation7] sm:$0xff] %vm183_vm1, %v665_v14  ;;  %v663_v18 = vmul.f32 %v659_v16, %v1188_v25 }
 0x2fb   :  { %v668_v19 = vadd.f32 %v664_v17, %v656_v12 }
 0x2fc   :  { %v667_v20 = vadd.f32 %v663_v18, %v655_v15 }
 0x2fd   :  { %672 = vst.msk [vmem:[#allocation7 + $0x18] sm:$0xff] %vm183_vm1, %v668_v19 }
 0x2fe   :  { %671 = vst.msk [vmem:[#allocation7 + $0x10] sm:$0xff] %vm183_vm1, %v667_v20 }
 0x2ff   :  { %975 = shalt.err (!%p972_p6)
}
 0x300   :  { %s976_s18 = scalar_lea.hbm %s1237_s10, 512 }
 0x301   :  { %p977_p7 = scmp.ne.s32.totalorder %s1237_s10, %s976_s18  ;;  %p980_p8 = scmp.lt.u32.totalorder %s976_s18, %s1237_s10 }
 0x303   :  { %p982_p9 = pnand %p980_p8, %p977_p7 }
 0x305   :  { %985 = shalt.err (!%p982_p9)
}
 0x306   :  { %684 = dma.vmem_to_hbm [thread:$0]  %s679_s17, 512, %s1237_s10, [#allocation4], %s993_s23, %s993_s23, %s994_s24  }
 0x307   :  { %990 = dma.done.wait [#allocation4], 512  }
 0x308   :  { %991 = vsyncadd [#allocation4], 4294966784 }
 0x309   :  { %688 = vsyncpa [#allocation3], 1 }
 0x30a   :  { %689 = vsyncpa [#allocation6], 1 }
 0x30b   :  { %690 = vsyncpa [#allocation4], 1 }

</bundles_post_ra>
